<compile_context>
chip_gen: v7x
topology: tpu7x:2x2x1
jax: 0.10.0
libtpu: 0.0.40
codegen_flags: <defaults>
</compile_context>

<pallas_src>
import functools
import math

import numpy as np
import jax
import jax.numpy as jnp
from jax.experimental import pallas as pl
from jax.experimental.pallas import tpu as pltpu


_LANE = 128
_MAX_TILE_J = 128           # resample: chunk-rows (of 128 conv positions) per grid step
_MAX_TILE_NF = 256          # codec: packets per grid step
_VMEM_LIMIT = 32 * 1024 * 1024   # v7x-safe scoped VMEM budget


def _round_up(x, m):
    return ((x + m - 1) // m) * m


def _cdiv(a, b):
    return (a + b - 1) // b


# ----------------------------------------------------------------------------
# torchaudio.functional.resample taps (sinc_interp_hann, width=6, rolloff=0.99)
# ----------------------------------------------------------------------------
@functools.lru_cache(maxsize=None)
def _sinc_resample_taps(orig_freq, new_freq, lowpass_filter_width=6, rolloff=0.99):
    g = math.gcd(int(orig_freq), int(new_freq))
    orig, new = int(orig_freq) // g, int(new_freq) // g
    if orig == new:
        return None
    base_freq = min(orig, new) * rolloff
    width = int(math.ceil(lowpass_filter_width * orig / base_freq))
    idx = np.arange(-width, width + orig, dtype=np.float64) / orig
    t = (-np.arange(new, dtype=np.float64) / new)[:, None] + idx[None, :]
    t = t * base_freq
    t = np.clip(t, -lowpass_filter_width, lowpass_filter_width)
    window = np.cos(t * np.pi / lowpass_filter_width / 2.0) ** 2
    t = t * np.pi
    scale = base_freq / orig
    safe_t = np.where(t == 0.0, 1.0, t)
    sinc = np.where(t == 0.0, 1.0, np.sin(safe_t) / safe_t)
    kernels = (sinc * window * scale).astype(np.float32)   # (new, K = 2*width + orig)
    return kernels, width, orig, new


# ----------------------------------------------------------------------------
# Pallas kernel 1: polyphase resample as a tiled MXU matmul with a banded tap matrix.
#   A-row J holds x_pad[J*128*orig : (J+1)*128*orig] (body) plus a 128-sample halo,
#   W[t, l*new + p] = taps[p, t - l*orig]  ->  out[J, l*new + p] = conv position 128J+l.
#   Flattening out is already time order (no transpose needed).
# ----------------------------------------------------------------------------
@functools.lru_cache(maxsize=None)
def _build_resample(orig_freq, new_freq, length):
    taps = _sinc_resample_taps(orig_freq, new_freq)
    if taps is None:
        return None
    kernels, width, orig, new = taps
    k_taps = kernels.shape[1]                     # <= 28 for these rate pairs
    num_pos = length // orig + 1                  # conv positions (torchaudio semantics)
    row_len = _LANE * orig                        # body samples per chunk-row
    n_cols = _LANE * new                          # output samples per chunk-row (lane-dense)
    n_rows = _cdiv(num_pos, _LANE)
    tile_j = min(_MAX_TILE_J, _round_up(n_rows, 8))
    jp = _round_up(n_rows, tile_j)
    num_tiles = jp // tile_j
    pad_len = (jp + 1) * row_len                  # padded signal length (body + halo)
    target_len = int(math.ceil(new * length / orig))

    # Banded weight matrix (pure numpy, built once per (rate pair, length) and cached).
    w = np.zeros((row_len + _LANE, n_cols), np.float32)
    for l in range(_LANE):
        for p in range(new):
            w[l * orig: l * orig + k_taps, l * new + p] = kernels[p]
    w_body = jnp.asarray(w[:row_len])             # (row_len, n_cols)
    w_halo = jnp.asarray(w[row_len:])             # (128, n_cols)

    def fir_kernel(body_ref, halo_ref, wb_ref, wh_ref, o_ref):
        o_ref[...] = (
            jnp.dot(body_ref[...], wb_ref[...], preferred_element_type=jnp.float32)
            + jnp.dot(halo_ref[...], wh_ref[...], preferred_element_type=jnp.float32))

    fir_call = pl.pallas_call(
        fir_kernel,
        out_shape=jax.ShapeDtypeStruct((jp, n_cols), jnp.float32),
        grid=(num_tiles,),
        in_specs=[
            pl.BlockSpec((tile_j, row_len), lambda i: (i, 0)),
            pl.BlockSpec((tile_j, _LANE), lambda i: (i, 0)),
            pl.BlockSpec((row_len, n_cols), lambda i: (0, 0)),   # resident across steps
            pl.BlockSpec((_LANE, n_cols), lambda i: (0, 0)),     # resident across steps
        ],
        out_specs=pl.BlockSpec((tile_j, n_cols), lambda i: (i, 0)),
        compiler_params=pltpu.CompilerParams(
            dimension_semantics=("parallel",),
            vmem_limit_bytes=_VMEM_LIMIT),
    )

    @jax.jit
    def run(x):
        x_pad = jnp.pad(x, (width, pad_len - width - length))        # cheap 1-D pad
        body = x_pad[: jp * row_len].reshape(jp, row_len)
        halo = x_pad[row_len:].reshape(jp, row_len)[:, :_LANE]       # small 1/orig copy
        out = fir_call(body, halo, w_body, w_halo)                   # (jp, 128*new)
        return out.reshape(-1)[:target_len]                          # already time order

    return run


# ----------------------------------------------------------------------------
# Pallas kernel 2: opus codec approximation (int16 quantize round-trip) fused with
# per-packet loss masking. Tiled over packets; keep mask is (NF, 1) broadcast in-kernel.
# ----------------------------------------------------------------------------
@functools.lru_cache(maxsize=None)
def _build_codec(length, frame_size):
    nf = _cdiv(length, frame_size)
    tile_nf = min(_MAX_TILE_NF, _round_up(nf, 8))
    nfp = _round_up(nf, tile_nf)
    num_tiles = nfp // tile_nf

    def codec_kernel(x_ref, keep_ref, o_ref):
        # int(s * 32768) truncates toward zero; int16 clip; decode = /32768; lost -> 0
        q = jnp.clip(jnp.trunc(x_ref[...] * 32768.0), -32768.0, 32767.0)
        o_ref[...] = q * (1.0 / 32768.0) * keep_ref[...]

    codec_call = pl.pallas_call(
        codec_kernel,
        out_shape=jax.ShapeDtypeStruct((nfp, frame_size), jnp.float32),
        grid=(num_tiles,),
        in_specs=[
            pl.BlockSpec((tile_nf, frame_size), lambda i: (i, 0)),
            pl.BlockSpec((tile_nf, 1), lambda i: (i, 0)),
        ],
        out_specs=pl.BlockSpec((tile_nf, frame_size), lambda i: (i, 0)),
        compiler_params=pltpu.CompilerParams(
            dimension_semantics=("parallel",),
            vmem_limit_bytes=_VMEM_LIMIT),
    )

    @jax.jit
    def run(sig, keep):
        frames = jnp.pad(sig, (0, nfp * frame_size - length)).reshape(nfp, frame_size)
        keep2 = jnp.pad(keep.astype(jnp.float32), (0, nfp - nf))[:, None]
        out = codec_call(frames, keep2)
        return out.reshape(-1)[: nf * frame_size]

    return run, nf


# ----------------------------------------------------------------------------
# OpusAugment forward pass.
# ----------------------------------------------------------------------------
class OpusAugmentPallas:
    def __init__(self, sample_rate, frame_duration, min_bps, max_bps,
                 min_packet_loss_rate, max_packet_loss_rate,
                 decode_missing_packet_rate, **kwargs):
        self.min_bps = min_bps
        self.max_bps = max_bps
        self.samples_per_second = sample_rate
        self.min_packet_loss_rate = min_packet_loss_rate
        self.max_packet_loss_rate = max_packet_loss_rate
        self.decode_missing_packet_rate = decode_missing_packet_rate
        self.channels = 1
        self.bytes_per_sample = 2
        self.desired_frame_duration = frame_duration / 1000.0
        # Hoist: warm the tap caches for all possible target rates.
        for tsr in (8000, 12000, 16000):
            _sinc_resample_taps(self.samples_per_second, tsr)
            _sinc_resample_taps(tsr, self.samples_per_second)

    def forward(self, x, key, bps=0, packet_loss_rate=-1.0, fec=True):
        # x: (1, T) float32 waveform at self.samples_per_second
        if bps == 0:
            bps = int(np.random.randint(self.min_bps, self.max_bps))
        if bps < 12000:
            target_samples_per_second = 8000
        elif bps < 15000:
            target_samples_per_second = 12000
        else:
            target_samples_per_second = 16000
        desired_frame_size = int(self.desired_frame_duration * target_samples_per_second)

        original_length = int(x.shape[-1])
        sig = jnp.asarray(x, jnp.float32)[0]

        down = _build_resample(self.samples_per_second, target_samples_per_second,
                               original_length)
        sig_t = sig if down is None else down(sig)

        if packet_loss_rate < 0.0:
            packet_loss_rate = float(
                np.random.rand() * (self.max_packet_loss_rate - self.min_packet_loss_rate)
                + self.min_packet_loss_rate)
        fec = False  # the reference module forces fec = False before the packet loop

        lt = int(sig_t.shape[0])
        codec_run, num_frames = _build_codec(lt, desired_frame_size)
        # Per-packet loss; the first packet (start == 0) is always decoded normally.
        u = jax.random.uniform(key, (num_frames,))
        keep = jnp.where(jnp.arange(num_frames) == 0, 1.0,
                         (u >= packet_loss_rate).astype(jnp.float32))
        decoded = codec_run(sig_t, keep)[:original_length]

        up = _build_resample(target_samples_per_second, self.samples_per_second,
                             int(decoded.shape[0]))
        out = decoded if up is None else up(decoded)

        out_len = int(out.shape[0])
        if out_len < original_length:
            out = jnp.concatenate(
                [out, jnp.zeros((original_length - out_len,), out.dtype)])
        elif out_len > original_length:
            out = out[:original_length]

        return out[None, :], bps, packet_loss_rate, fec, target_samples_per_second


# ----------------------------------------------------------------------------
# Pure-numpy (float64) reference of the approximated pipeline, for verification.
# ----------------------------------------------------------------------------
def _np_resample(x, orig_freq, new_freq):
    taps = _sinc_resample_taps(orig_freq, new_freq)
    if taps is None:
        return x
    kernels, width, orig, new = taps
    k64 = kernels.astype(np.float64)
    t_len = x.shape[0]
    xp = np.pad(x.astype(np.float64), (width, width + orig))
    num_pos = t_len // orig + 1
    kk = kernels.shape[1]
    out = np.zeros((num_pos, new), np.float64)
    for m in range(num_pos):
        out[m] = k64 @ xp[m * orig: m * orig + kk]
    return out.reshape(-1)[: int(math.ceil(new * t_len / orig))]


def _np_reference_forward(x, sample_rate, target_sr, frame_size):
    """Reference with zero packet loss (deterministic)."""
    original_length = x.shape[0]
    sig = _np_resample(x, sample_rate, target_sr)
    q = np.clip(np.trunc(sig * 32768.0), -32768.0, 32767.0) / 32768.0
    nf = int(math.ceil(len(q) / frame_size))
    dec = np.pad(q, (0, nf * frame_size - len(q)))[:original_length]
    out = _np_resample(dec, target_sr, sample_rate)
    if len(out) < original_length:
        out = np.pad(out, (0, original_length - len(out)))
    return out[:original_length]


if __name__ == "__main__":
    np.random.seed(0)
    key = jax.random.PRNGKey(0)
    k_audio, k_loss = jax.random.split(key)

    sample_rate = 16000
    T = 1600  # 0.1 s of audio -> several 20 ms opus packets at the 12 kHz target rate
    x = (jax.random.uniform(k_audio, (1, T), jnp.float32) - 0.5)   # (channels=1, time)

    aug = OpusAugmentPallas(
        sample_rate=sample_rate,
        frame_duration=20,
        min_bps=6000,
        max_bps=20000,
        min_packet_loss_rate=0.0,
        max_packet_loss_rate=0.3,
        decode_missing_packet_rate=0.5,
    )

    # Deterministic path (no packet loss) checked against the pure-numpy reference.
    y0, bps0, plr0, fec0, tsr0 = aug.forward(x, k_loss, bps=13000, packet_loss_rate=0.0)
    y0 = jax.block_until_ready(y0)
    ref = _np_reference_forward(np.asarray(x[0], np.float64), sample_rate, tsr0,
                                int(aug.desired_frame_duration * tsr0))
    err = float(np.max(np.abs(np.asarray(y0[0], np.float64) - ref)))
    assert err < 1e-3, f"max abs error vs reference: {err}"

    # Stochastic packet-loss path.
    y, bps, plr, fec, target_sr = aug.forward(
        x, k_loss, bps=13000, packet_loss_rate=0.2, fec=True)
    y = jax.block_until_ready(y)

    assert y.shape == x.shape, (y.shape, x.shape)
    assert y.dtype == jnp.float32
    assert bool(jnp.all(jnp.isfinite(y)))
    print("KERNEL_OK")
</pallas_src>

<mosaic_0001>
module attributes {stable_mosaic.version = 11 : i64} {
  func.func @fir_kernel(%arg0: i32, %arg1: memref<8x512xf32, #tpu.memory_space<vmem>>, %arg2: memref<8x128xf32, #tpu.memory_space<vmem>>, %arg3: memref<512x384xf32, #tpu.memory_space<vmem>>, %arg4: memref<128x384xf32, #tpu.memory_space<vmem>>, %arg5: memref<8x384xf32, #tpu.memory_space<vmem>>) attributes {dimension_semantics = [#tpu.dimension_semantics<parallel>], iteration_bounds = array<i64: 1>, scalar_prefetch = 0 : i64, scratch_operands = 0 : i64, tpu.core_type = #tpu.core_type<tc>, window_params = [{transform_indices = @transform_0, window_bounds = array<i64: 8, 512>}, {transform_indices = @transform_1, window_bounds = array<i64: 8, 128>}, {pipeline_mode = #tpu.pipeline_mode<synchronous>, transform_indices = @transform_2, window_bounds = array<i64: 512, 384>}, {pipeline_mode = #tpu.pipeline_mode<synchronous>, transform_indices = @transform_3, window_bounds = array<i64: 128, 384>}, {transform_indices = @transform_4, window_bounds = array<i64: 8, 384>}]} {
    %c0 = arith.constant 0 : index
    %c0_0 = arith.constant 0 : index
    %0 = vector.load %arg1[%c0, %c0_0] : memref<8x512xf32, #tpu.memory_space<vmem>>, vector<8x512xf32>
    %c0_1 = arith.constant 0 : index
    %c0_2 = arith.constant 0 : index
    %1 = vector.load %arg3[%c0_1, %c0_2] : memref<512x384xf32, #tpu.memory_space<vmem>>, vector<512x384xf32>
    %cst = arith.constant dense<0.000000e+00> : vector<8x384xf32>
    %2 = tpu.matmul %0, %1, %cst {dimension_numbers = #tpu.dot_dimension_numbers<[1], [0], [0], [1], [0, 0, 1, 1], [], []>} : vector<8x512xf32>, vector<512x384xf32>, vector<8x384xf32> -> vector<8x384xf32>
    %c0_3 = arith.constant 0 : index
    %c0_4 = arith.constant 0 : index
    %3 = vector.load %arg2[%c0_3, %c0_4] : memref<8x128xf32, #tpu.memory_space<vmem>>, vector<8x128xf32>
    %c0_5 = arith.constant 0 : index
    %c0_6 = arith.constant 0 : index
    %4 = vector.load %arg4[%c0_5, %c0_6] : memref<128x384xf32, #tpu.memory_space<vmem>>, vector<128x384xf32>
    %cst_7 = arith.constant dense<0.000000e+00> : vector<8x384xf32>
    %5 = tpu.matmul %3, %4, %cst_7 {dimension_numbers = #tpu.dot_dimension_numbers<[1], [0], [0], [1], [0, 0, 1, 1], [], []>} : vector<8x128xf32>, vector<128x384xf32>, vector<8x384xf32> -> vector<8x384xf32>
    %6 = arith.addf %2, %5 : vector<8x384xf32>
    %c0_8 = arith.constant 0 : index
    %c0_9 = arith.constant 0 : index
    %7 = vector.load %arg5[%c0_8, %c0_9] : memref<8x384xf32, #tpu.memory_space<vmem>>, vector<8x384xf32>
    tpu.vector_store %arg5[%c0_8, %c0_9], %6 {strides = array<i32>} : memref<8x384xf32, #tpu.memory_space<vmem>>, vector<8x384xf32>,
    return
  }
  func.func @transform_0(%arg0: i32) -> (i32, i32) {
    %c0_i32 = arith.constant 0 : i32
    %c0_i32_0 = arith.constant 0 : i32
    return %arg0, %c0_i32 : i32, i32
  }
  func.func @transform_1(%arg0: i32) -> (i32, i32) {
    %c0_i32 = arith.constant 0 : i32
    %c0_i32_0 = arith.constant 0 : i32
    return %arg0, %c0_i32 : i32, i32
  }
  func.func @transform_2(%arg0: i32) -> (i32, i32) {
    %c0_i32 = arith.constant 0 : i32
    %c0_i32_0 = arith.constant 0 : i32
    %c0_i32_1 = arith.constant 0 : i32
    return %c0_i32, %c0_i32_0 : i32, i32
  }
  func.func @transform_3(%arg0: i32) -> (i32, i32) {
    %c0_i32 = arith.constant 0 : i32
    %c0_i32_0 = arith.constant 0 : i32
    %c0_i32_1 = arith.constant 0 : i32
    return %c0_i32, %c0_i32_0 : i32, i32
  }
  func.func @transform_4(%arg0: i32) -> (i32, i32) {
    %c0_i32 = arith.constant 0 : i32
    %c0_i32_0 = arith.constant 0 : i32
    return %arg0, %c0_i32 : i32, i32
  }
}

</mosaic_0001>

<bundles_post_ra>
// kernel: run.1
= control target key start
LH: loop header
LB: loop body
LE: loop exit
PB: predicated region body
PF: predicated region fallthrough
CT: control target
= control target key end

     0   :  { %9 = vsyncpa [#allocation3], 0  ;;  %s1257_s0 = inlined_call_operand.vmem [shape: f32[8,512], index: 0, kind: input, shape index: {}]   ;;  %s1258_s1 = inlined_call_operand.vmem [shape: f32[8,128], index: 1, kind: input, shape index: {}]   ;;  %s1259_s2 = inlined_call_operand.hbm [shape: f32[512,384], index: 2, kind: input, shape index: {}]   ;;  %s1260_s3 = inlined_call_operand.hbm [shape: f32[128,384], index: 3, kind: input, shape index: {}]   ;;  %s1261_s4 = inlined_call_operand.vmem [shape: f32[8,384], index: 4, kind: output, shape index: {}]  }
   0x1   :  { %10 = vsyncpa [#allocation5], 0  ;;  %s1151_s15 = smov [#allocation2]   ;;  %s1103_s19 = scalar_lea.hbm %s1259_s2, 24576 }
   0x2   :  { %s20_s16 = sshll.u32 %s1151_s15, 4  ;;  %p1104_p0 = scmp.ne.s32.totalorder %s1259_s2, %s1103_s19  ;;  %s21_s16 = int_to_ptr.vmem [resolvable:$true] %s20_s16 }
   0x3   :  { %p1107_p1 = scmp.lt.u32.totalorder %s1103_s19, %s1259_s2 }
   0x5   :  { %p1109_p2 = pnand %p1107_p1, %p1104_p0 }
   0x7   :  { %1112 = shalt.err (!%p1109_p2)
}
   0x8   :  { %s1113_s24 = scalar_lea.vmem %s21_s16, 24576  ;;  %p1118_p4 = scmp.lt.s32.totalorder %s21_s16, %s21_s16 }
   0x9   :  { %p1114_p3 = scmp.ne.s32.totalorder %s21_s16, %s1113_s24  ;;  %p1119_p5 = scmp.lt.s32.totalorder %s1113_s24, %s1113_s24 }
   0xb   :  { %p1120_p6 = por %p1119_p5, %p1118_p4 }
   0xd   :  { %p1121_p7 = pnand %p1120_p6, %p1114_p3 }
   0xf   :  { %1124 = shalt.err (!%p1121_p7)
}
  0x10   :  { %s1152_s25 = smov 384   ;;  %s1153_s26 = smov 24  }
  0x11   :  { %26 = dma.hbm_to_vmem [thread:$0]  %s1259_s2, 24576, %s21_s16, [#allocation3], %s1152_s25, %s1152_s25, %s1153_s26  }
  0x12   :  { %s1154_s29 = smov [#allocation4]   ;;  %s1125_s7 = scalar_lea.hbm %s1260_s3, 6144 }
  0x13   :  { %s32_s30 = sshll.u32 %s1154_s29, 4  ;;  %p1126_p8 = scmp.ne.s32.totalorder %s1260_s3, %s1125_s7  ;;  %s33_s30 = int_to_ptr.vmem [resolvable:$true] %s32_s30 }
  0x14   :  { %p1129_p9 = scmp.lt.u32.totalorder %s1125_s7, %s1260_s3 }
  0x16   :  { %p1131_p10 = pnand %p1129_p9, %p1126_p8 }
  0x18   :  { %1134 = shalt.err (!%p1131_p10)
}
  0x19   :  { %s1135_s12 = scalar_lea.vmem %s33_s30, 6144  ;;  %p1140_p12 = scmp.lt.s32.totalorder %s33_s30, %s33_s30 }
  0x1a   :  { %p1136_p11 = scmp.ne.s32.totalorder %s33_s30, %s1135_s12  ;;  %p1141_p13 = scmp.lt.s32.totalorder %s1135_s12, %s1135_s12 }
  0x1c   :  { %p1142_p0 = por %p1141_p13, %p1140_p12 }
  0x1e   :  { %p1143_p1 = pnand %p1142_p0, %p1136_p11 }
  0x20   :  { %1146 = shalt.err (!%p1143_p1)
}
  0x21   :  { %38 = dma.hbm_to_vmem [thread:$0]  %s1260_s3, 6144, %s33_s30, [#allocation5], %s1152_s25, %s1152_s25, %s1153_s26  }
  0x22   :  { %1147 = dma.done.wait [#allocation3], 24576  }
  0x23   :  { %1148 = vsyncadd [#allocation3], 4294942720 }
  0x24   :  { %1149 = dma.done.wait [#allocation5], 6144  }
  0x25   :  { %1150 = vsyncadd [#allocation5], 4294961152  ;;  %v1155_v0 = vmov 0.0   ;;  %v243_v1 = vld [vmem:[#allocation4 + $0x8] sm:$0xff]  ;;  %v246_v2 = vld [vmem:[#allocation4 + $0x20] sm:$0xff]  ;;  %vm1157_vm0 = vmmov 0  }
  0x26   :  { %354 = vmatprep.mubr.f32.mxu1 %v1155_v0  ;;  %v50_v3 = vld [vmem:[#allocation2 + $0x8] sm:$0xff]  ;;  %v844_v4 = vpack.c.bf16 %v246_v2, %v243_v1  ;;  %v53_v5 = vld [vmem:[#allocation2 + $0x20] sm:$0xff]  ;;  %v245_v7 = vld [vmem:[#allocation4 + $0x18] sm:$0xff] }
  0x27   :  { %v242_v6 = vld [vmem:[#allocation4] sm:$0xff]  ;;  %v900_v8 = vpack.c.bf16 %v53_v5, %v50_v3  ;;  %v52_v11 = vld [vmem:[#allocation2 + $0x18] sm:$0xff]  ;;  %v252_v14 = vld [vmem:[#allocation4 + $0x50] sm:$0xff] }
  0x28   :  { %v846_v9 = vpack.c.bf16 %v245_v7, %v242_v6  ;;  %v49_v10 = vld [vmem:[#allocation2] sm:$0xff]  ;;  %v249_v12 = vld [vmem:[#allocation4 + $0x38] sm:$0xff]  ;;  %845 = vmatprep.subr.bf16.mxu1 %v844_v4  ;;  %v59_v16 = vld [vmem:[#allocation2 + $0x50] sm:$0xff] }
  0x29   :  { %v902_v13 = vpack.c.bf16 %v52_v11, %v49_v10  ;;  %v56_v15 = vld [vmem:[#allocation2 + $0x38] sm:$0xff]  ;;  %901 = vmatprep.subr.bf16.mxu0 %v900_v8  ;;  %v848_v17 = vpack.c.bf16 %v252_v14, %v249_v12  ;;  %v248_v19 = vld [vmem:[#allocation4 + $0x30] sm:$0xff]  ;;  %v251_v20 = vld [vmem:[#allocation4 + $0x48] sm:$0xff] }
  0x2a   :  { %847 = vmatpush1.bf16.msra.mxu1 %v846_v9  ;;  %v904_v18 = vpack.c.bf16 %v59_v16, %v56_v15  ;;  %v55_v21 = vld [vmem:[#allocation2 + $0x30] sm:$0xff]  ;;  %v850_v22 = vpack.c.bf16 %v251_v20, %v248_v19  ;;  %v58_v23 = vld [vmem:[#allocation2 + $0x48] sm:$0xff]  ;;  %v258_v25 = vld [vmem:[#allocation4 + $0x80] sm:$0xff] }
  0x2b   :  { %903 = vmatpush1.bf16.msra.mxu0 %v902_v13  ;;  %v255_v24 = vld [vmem:[#allocation4 + $0x68] sm:$0xff]  ;;  %849 = vmatprep.subr.bf16.mxu1 %v848_v17  ;;  %v906_v26 = vpack.c.bf16 %v58_v23, %v55_v21  ;;  %v65_v29 = vld [vmem:[#allocation2 + $0x80] sm:$0xff]  ;;  %v257_v32 = vld [vmem:[#allocation4 + $0x78] sm:$0xff] }
  0x2c   :  { %905 = vmatprep.subr.bf16.mxu0 %v904_v18  ;;  %v852_v27 = vpack.c.bf16 %v258_v25, %v255_v24  ;;  %v62_v28 = vld [vmem:[#allocation2 + $0x68] sm:$0xff]  ;;  %v254_v30 = vld [vmem:[#allocation4 + $0x60] sm:$0xff]  ;;  %v64_v34 = vld [vmem:[#allocation2 + $0x78] sm:$0xff] }
  0x2d   :  { %v908_v31 = vpack.c.bf16 %v65_v29, %v62_v28  ;;  %v61_v33 = vld [vmem:[#allocation2 + $0x60] sm:$0xff]  ;;  %v854_v35 = vpack.c.bf16 %v257_v32, %v254_v30  ;;  %v261_v36 = vld [vmem:[#allocation4 + $0x98] sm:$0xff]  ;;  %v264_v37 = vld [vmem:[#allocation4 + $0xb0] sm:$0xff] }
  0x2e   :  { %851 = vmatpush1.bf16.msra.mxu1 %v850_v22  ;;  %v68_v38 = vld [vmem:[#allocation2 + $0x98] sm:$0xff]  ;;  %v910_v39 = vpack.c.bf16 %v64_v34, %v61_v33  ;;  %v856_v40 = vpack.c.bf16 %v264_v37, %v261_v36  ;;  %v71_v41 = vld [vmem:[#allocation2 + $0xb0] sm:$0xff]  ;;  %v263_v43 = vld [vmem:[#allocation4 + $0xa8] sm:$0xff] }
  0x2f   :  { %907 = vmatpush1.bf16.msra.mxu0 %v906_v26  ;;  %853 = vmatprep.subr.bf16.mxu1 %v852_v27  ;;  %v260_v42 = vld [vmem:[#allocation4 + $0x90] sm:$0xff]  ;;  %v912_v44 = vpack.c.bf16 %v71_v41, %v68_v38  ;;  %v70_v46 = vld [vmem:[#allocation2 + $0xa8] sm:$0xff]  ;;  %v270_v48 = vld [vmem:[#allocation4 + $0xe0] sm:$0xff] }
  0x30   :  { %909 = vmatprep.subr.bf16.mxu0 %v908_v31  ;;  %v67_v45 = vld [vmem:[#allocation2 + $0x90] sm:$0xff]  ;;  %v267_v47 = vld [vmem:[#allocation4 + $0xc8] sm:$0xff]  ;;  %v77_v50 = vld [vmem:[#allocation2 + $0xe0] sm:$0xff]  ;;  %v858_v51 = vpack.c.bf16 %v263_v43, %v260_v42 }
  0x31   :  { %v74_v49 = vld [vmem:[#allocation2 + $0xc8] sm:$0xff]  ;;  %v914_v52 = vpack.c.bf16 %v70_v46, %v67_v45  ;;  %v860_v53 = vpack.c.bf16 %v270_v48, %v267_v47  ;;  %v266_v54 = vld [vmem:[#allocation4 + $0xc0] sm:$0xff]  ;;  %v269_v55 = vld [vmem:[#allocation4 + $0xd8] sm:$0xff]  ;;  %v1156_v45 = vmov 0.0|0.0  }
  0x32   :  { %855 = vmatpush1.bf16.msra.mxu1 %v854_v35  ;;  %v73_v56 = vld [vmem:[#allocation2 + $0xc0] sm:$0xff]  ;;  %v916_v57 = vpack.c.bf16 %v77_v50, %v74_v49  ;;  %v76_v58 = vld [vmem:[#allocation2 + $0xd8] sm:$0xff]  ;;  %v276_v60 = vld [vmem:[#allocation4 + $0x110] sm:$0xff]  ;;  %v862_v63 = vpack.c.bf16 %v269_v55, %v266_v54 }
  0x33   :  { %911 = vmatpush1.bf16.msra.mxu0 %v910_v39  ;;  %857 = vmatprep.subr.bf16.mxu1 %v856_v40  ;;  %v273_v59 = vld [vmem:[#allocation4 + $0xf8] sm:$0xff]  ;;  %v83_v62 = vld [vmem:[#allocation2 + $0x110] sm:$0xff]  ;;  %v918_v1 = vpack.c.bf16 %v76_v58, %v73_v56  ;;  %v275_v4 = vld [vmem:[#allocation4 + $0x108] sm:$0xff] }
  0x34   :  { %913 = vmatprep.subr.bf16.mxu0 %v912_v44  ;;  %v80_v61 = vld [vmem:[#allocation2 + $0xf8] sm:$0xff]  ;;  %v864_v2 = vpack.c.bf16 %v276_v60, %v273_v59  ;;  %v272_v3 = vld [vmem:[#allocation4 + $0xf0] sm:$0xff]  ;;  %v82_v7 = vld [vmem:[#allocation2 + $0x108] sm:$0xff] }
  0x35   :  { %v79_v5 = vld [vmem:[#allocation2 + $0xf0] sm:$0xff]  ;;  %v920_v6 = vpack.c.bf16 %v83_v62, %v80_v61  ;;  %v279_v8 = vld [vmem:[#allocation4 + $0x128] sm:$0xff]  ;;  %v282_v9 = vld [vmem:[#allocation4 + $0x140] sm:$0xff]  ;;  %v866_v12 = vpack.c.bf16 %v275_v4, %v272_v3 }
  0x36   :  { %859 = vmatpush1.bf16.msra.mxu1 %v858_v51  ;;  %v86_v10 = vld [vmem:[#allocation2 + $0x128] sm:$0xff]  ;;  %v89_v11 = vld [vmem:[#allocation2 + $0x140] sm:$0xff]  ;;  %v922_v13 = vpack.c.bf16 %v82_v7, %v79_v5  ;;  %v868_v14 = vpack.c.bf16 %v282_v9, %v279_v8  ;;  %v281_v16 = vld [vmem:[#allocation4 + $0x138] sm:$0xff] }
  0x37   :  { %915 = vmatpush1.bf16.msra.mxu0 %v914_v52  ;;  %861 = vmatprep.subr.bf16.mxu1 %v860_v53  ;;  %v278_v15 = vld [vmem:[#allocation4 + $0x120] sm:$0xff]  ;;  %v924_v18 = vpack.c.bf16 %v89_v11, %v86_v10  ;;  %v88_v19 = vld [vmem:[#allocation2 + $0x138] sm:$0xff]  ;;  %v288_v21 = vld [vmem:[#allocation4 + $0x170] sm:$0xff] }
  0x38   :  { %917 = vmatprep.subr.bf16.mxu0 %v916_v57  ;;  %v85_v17 = vld [vmem:[#allocation2 + $0x120] sm:$0xff]  ;;  %v285_v20 = vld [vmem:[#allocation4 + $0x158] sm:$0xff]  ;;  %v95_v23 = vld [vmem:[#allocation2 + $0x170] sm:$0xff]  ;;  %v870_v24 = vpack.c.bf16 %v281_v16, %v278_v15 }
  0x39   :  { %v92_v22 = vld [vmem:[#allocation2 + $0x158] sm:$0xff]  ;;  %v926_v25 = vpack.c.bf16 %v88_v19, %v85_v17  ;;  %v872_v26 = vpack.c.bf16 %v288_v21, %v285_v20  ;;  %v284_v27 = vld [vmem:[#allocation4 + $0x150] sm:$0xff]  ;;  %v287_v28 = vld [vmem:[#allocation4 + $0x168] sm:$0xff] }
  0x3a   :  { %863 = vmatpush1.bf16.msra.mxu1 %v862_v63  ;;  %v928_v29 = vpack.c.bf16 %v95_v23, %v92_v22  ;;  %v91_v30 = vld [vmem:[#allocation2 + $0x150] sm:$0xff]  ;;  %v94_v31 = vld [vmem:[#allocation2 + $0x168] sm:$0xff]  ;;  %v101_v33 = vld [vmem:[#allocation2 + $0x1a0] sm:$0xff]  ;;  %v874_v34 = vpack.c.bf16 %v287_v28, %v284_v27 }
  0x3b   :  { %919 = vmatpush1.bf16.msra.mxu0 %v918_v1  ;;  %865 = vmatprep.subr.bf16.mxu1 %v864_v2  ;;  %v98_v32 = vld [vmem:[#allocation2 + $0x188] sm:$0xff]  ;;  %v930_v35 = vpack.c.bf16 %v94_v31, %v91_v30  ;;  %v244_v36 = vld [vmem:[#allocation4 + $0x10] sm:$0xff]  ;;  %v97_v39 = vld [vmem:[#allocation2 + $0x180] sm:$0xff] }
  0x3c   :  { %921 = vmatprep.subr.bf16.mxu0 %v920_v6  ;;  %v247_v37 = vld [vmem:[#allocation4 + $0x28] sm:$0xff]  ;;  %v932_v38 = vpack.c.bf16 %v101_v33, %v98_v32  ;;  %v100_v40 = vld [vmem:[#allocation2 + $0x198] sm:$0xff]  ;;  %v107_v42 = vld [vmem:[#allocation2 + $0x1d0] sm:$0xff] }
  0x3d   :  { %v104_v41 = vld [vmem:[#allocation2 + $0x1b8] sm:$0xff]  ;;  %v1211_v43 = vld [vmem:[%s1258_s1] sm:$0xff]  ;;  %v877_v44 = vpack.c.bf16 %v247_v37, %v244_v36  ;;  %v934_v46 = vpack.c.bf16 %v100_v40, %v97_v39  ;;  %v103_v50 = vld [vmem:[#allocation2 + $0x1b0] sm:$0xff] }
  0x3e   :  { %867 = vmatpush1.bf16.msra.mxu1 %v866_v12  ;;  %v250_v47 = vld [vmem:[#allocation4 + $0x40] sm:$0xff]  ;;  %v253_v48 = vld [vmem:[#allocation4 + $0x58] sm:$0xff]  ;;  %v936_v49 = vpack.c.bf16 %v107_v42, %v104_v41  ;;  %v106_v51 = vld [vmem:[#allocation2 + $0x1c8] sm:$0xff] }
  0x3f   :  { %923 = vmatpush1.bf16.msra.mxu0 %v922_v13  ;;  %869 = vmatprep.subr.bf16.mxu1 %v868_v14  ;;  %v110_v52 = vld [vmem:[#allocation2 + $0x1e8] sm:$0xff]  ;;  %v113_v53 = vld [vmem:[#allocation2 + $0x200] sm:$0xff]  ;;  %v880_v54 = vpack.c.bf16 %v253_v48, %v250_v47  ;;  %v938_v55 = vpack.c.bf16 %v106_v51, %v103_v50  ;;  %v256_v56 = vld [vmem:[#allocation4 + $0x70] sm:$0xff] }
  0x40   :  { %925 = vmatprep.subr.bf16.mxu0 %v924_v18  ;;  %v259_v57 = vld [vmem:[#allocation4 + $0x88] sm:$0xff]  ;;  %v940_v59 = vpack.c.bf16 %v113_v53, %v110_v52  ;;  %v109_v60 = vld [vmem:[#allocation2 + $0x1e0] sm:$0xff]  ;;  %v112_v61 = vld [vmem:[#allocation2 + $0x1f8] sm:$0xff] }
  0x41   :  { %v1220_v58 = vld [vmem:[%s1257_s0 + $0x8] sm:$0xff]  ;;  %v116_v62 = vld [vmem:[#allocation2 + $0x218] sm:$0xff]  ;;  %v119_v63 = vld [vmem:[#allocation2 + $0x230] sm:$0xff]  ;;  %v942_v1 = vpack.c.bf16 %v112_v61, %v109_v60 }
  0x42   :  { %871 = vmatpush1.bf16.msra.mxu1 %v870_v24  ;;  %495 = vmatprep.mubr.f32.mxu0 %v1220_v58  ;;  %v262_v2 = vld [vmem:[#allocation4 + $0xa0] sm:$0xff]  ;;  %v265_v3 = vld [vmem:[#allocation4 + $0xb8] sm:$0xff]  ;;  %v944_v4 = vpack.c.bf16 %v119_v63, %v116_v62  ;;  %v115_v5 = vld [vmem:[#allocation2 + $0x210] sm:$0xff] }
  0x43   :  { %927 = vmatpush1.bf16.msra.mxu0 %v926_v25  ;;  %873 = vmatprep.subr.bf16.mxu1 %v872_v26  ;;  %v118_v6 = vld [vmem:[#allocation2 + $0x228] sm:$0xff]  ;;  %v125_v8 = vld [vmem:[#allocation2 + $0x260] sm:$0xff]  ;;  %v886_v9 = vpack.c.bf16 %v265_v3, %v262_v2  ;;  %v268_v11 = vld [vmem:[#allocation4 + $0xd0] sm:$0xff] }
  0x44   :  { %929 = vmatprep.subr.bf16.mxu0 %v928_v29  ;;  %v122_v7 = vld [vmem:[#allocation2 + $0x248] sm:$0xff]  ;;  %v946_v10 = vpack.c.bf16 %v118_v6, %v115_v5  ;;  %v121_v14 = vld [vmem:[#allocation2 + $0x240] sm:$0xff]  ;;  %v124_v15 = vld [vmem:[#allocation2 + $0x258] sm:$0xff] }
  0x45   :  { %v271_v12 = vld [vmem:[#allocation4 + $0xe8] sm:$0xff]  ;;  %v948_v13 = vpack.c.bf16 %v125_v8, %v122_v7  ;;  %v128_v16 = vld [vmem:[#allocation2 + $0x278] sm:$0xff]  ;;  %v131_v17 = vld [vmem:[#allocation2 + $0x290] sm:$0xff]  ;;  %v950_v19 = vpack.c.bf16 %v124_v15, %v121_v14 }
  0x46   :  { %875 = vmatpush1.bf16.msra.mxu1 %v874_v34  ;;  %v889_v18 = vpack.c.bf16 %v271_v12, %v268_v11  ;;  %v274_v20 = vld [vmem:[#allocation4 + $0x100] sm:$0xff]  ;;  %v277_v21 = vld [vmem:[#allocation4 + $0x118] sm:$0xff]  ;;  %v952_v22 = vpack.c.bf16 %v131_v17, %v128_v16  ;;  %v127_v23 = vld [vmem:[#allocation2 + $0x270] sm:$0xff] }
  0x47   :  { %931 = vmatpush1.bf16.msra.mxu0 %v930_v35  ;;  %876 = vmatprep.subr.bf16.mxu1 %v1156_v45  ;;  %v130_v24 = vld [vmem:[#allocation2 + $0x288] sm:$0xff]  ;;  %v137_v26 = vld [vmem:[#allocation2 + $0x2c0] sm:$0xff]  ;;  %v892_v27 = vpack.c.bf16 %v277_v21, %v274_v20  ;;  %v280_v29 = vld [vmem:[#allocation4 + $0x130] sm:$0xff] }
  0x48   :  { %933 = vmatprep.subr.bf16.mxu0 %v932_v38  ;;  %v134_v25 = vld [vmem:[#allocation2 + $0x2a8] sm:$0xff]  ;;  %v954_v28 = vpack.c.bf16 %v130_v24, %v127_v23  ;;  %v133_v32 = vld [vmem:[#allocation2 + $0x2a0] sm:$0xff]  ;;  %v136_v33 = vld [vmem:[#allocation2 + $0x2b8] sm:$0xff] }
  0x49   :  { %355 = vmatmul.mubr.f32.vlgmr.msra.gmra.mrb[0].mxu1 %v1211_v43  ;;  %v283_v30 = vld [vmem:[#allocation4 + $0x148] sm:$0xff]  ;;  %v956_v31 = vpack.c.bf16 %v137_v26, %v134_v25  ;;  %v140_v34 = vld [vmem:[#allocation2 + $0x2d8] sm:$0xff]  ;;  %v143_v35 = vld [vmem:[#allocation2 + $0x2f0] sm:$0xff]  ;;  %v958_v37 = vpack.c.bf16 %v136_v33, %v133_v32 }
  0x4a   :  { %878 = vmatpush3.bf16.msra.mxu1 %v877_v44  ;;  %841 = vmatprep.mubr.msk.f32.mxu1 %vm1157_vm0, %v1155_v0  ;;  %v883_v0 = vpack.c.bf16 %v259_v57, %v256_v56  ;;  %v895_v36 = vpack.c.bf16 %v283_v30, %v280_v29  ;;  %v286_v38 = vld [vmem:[#allocation4 + $0x160] sm:$0xff]  ;;  %v289_v39 = vld [vmem:[#allocation4 + $0x178] sm:$0xff]  ;;  %v139_v40 = vld [vmem:[#allocation2 + $0x2d0] sm:$0xff]  ;;  %v960_v41 = vpack.c.bf16 %v143_v35, %v140_v34 }
  0x4b   :  { %935 = vmatpush1.bf16.msra.mxu0 %v934_v46  ;;  %879 = vmatprep.subr.bf16.mxu1 %v1156_v45  ;;  %v142_v42 = vld [vmem:[#allocation2 + $0x2e8] sm:$0xff]  ;;  %v99_v44 = vld [vmem:[#allocation2 + $0x190] sm:$0xff]  ;;  %v149_v48 = vld [vmem:[#allocation2 + $0x320] sm:$0xff] }
  0x4c   :  { %937 = vmatprep.subr.bf16.mxu0 %v936_v49  ;;  %v102_v46 = vld [vmem:[#allocation2 + $0x1a8] sm:$0xff]  ;;  %v898_v49 = vpack.c.bf16 %v289_v39, %v286_v38  ;;  %v962_v50 = vpack.c.bf16 %v142_v42, %v139_v40  ;;  %v145_v52 = vld [vmem:[#allocation2 + $0x300] sm:$0xff]  ;;  %v51_v53 = vld [vmem:[#allocation2 + $0x10] sm:$0xff] }
  0x4d   :  { %v146_v47 = vld [vmem:[#allocation2 + $0x308] sm:$0xff]  ;;  %v1028_v51 = vpack.c.bf16 %v102_v46, %v99_v44  ;;  %v148_v56 = vld [vmem:[#allocation2 + $0x318] sm:$0xff]  ;;  %v105_v57 = vld [vmem:[#allocation2 + $0x1c0] sm:$0xff] }
  0x4e   :  { %881 = vmatpush3.bf16.msra.mxu1 %v880_v54  ;;  %v54_v54 = vld [vmem:[#allocation2 + $0x28] sm:$0xff]  ;;  %v152_v60 = vld [vmem:[#allocation2 + $0x338] sm:$0xff]  ;;  %v155_v61 = vld [vmem:[#allocation2 + $0x350] sm:$0xff] }
  0x4f   :  { %939 = vmatpush1.bf16.msra.mxu0 %v938_v55  ;;  %882 = vmatprep.subr.bf16.mxu1 %v1156_v45  ;;  %v964_v55 = vpack.c.bf16 %v149_v48, %v146_v47  ;;  %v1232_v62 = vld [vmem:[%s1257_s0] sm:$0xff]  ;;  %v1030_v63 = vpack.c.bf16 %v54_v54, %v51_v53  ;;  %v60_v3 = vld [vmem:[#allocation2 + $0x58] sm:$0xff]  ;;  %v154_v5 = vld [vmem:[#allocation2 + $0x348] sm:$0xff] }
  0x50   :  { %941 = vmatprep.subr.bf16.mxu0 %v940_v59  ;;  %v108_v59 = vld [vmem:[#allocation2 + $0x1d8] sm:$0xff]  ;;  %v57_v2 = vld [vmem:[#allocation2 + $0x40] sm:$0xff]  ;;  %v111_v6 = vld [vmem:[#allocation2 + $0x1f0] sm:$0xff] }
  0x51   :  { %v114_v7 = vld [vmem:[#allocation2 + $0x208] sm:$0xff]  ;;  %v63_v14 = vld [vmem:[#allocation2 + $0x70] sm:$0xff]  ;;  %v160_v17 = vld [vmem:[#allocation2 + $0x378] sm:$0xff] }
  0x52   :  { %884 = vmatpush3.bf16.msra.mxu1 %v883_v0  ;;  %v1032_v0 = vpack.c.bf16 %v108_v59, %v105_v57  ;;  %v158_v8 = vld [vmem:[#allocation2 + $0x368] sm:$0xff]  ;;  %v1036_v12 = vpack.c.bf16 %v114_v7, %v111_v6  ;;  %v167_v20 = vld [vmem:[#allocation2 + $0x3b0] sm:$0xff]  ;;  %v69_v25 = vld [vmem:[#allocation2 + $0xa0] sm:$0xff] }
  0x53   :  { %943 = vmatpush1.bf16.msra.mxu0 %v942_v1  ;;  %885 = vmatprep.subr.bf16.mxu1 %v1156_v45  ;;  %v151_v1 = vld [vmem:[#allocation2 + $0x330] sm:$0xff]  ;;  %v66_v15 = vld [vmem:[#allocation2 + $0x88] sm:$0xff]  ;;  %v72_v26 = vld [vmem:[#allocation2 + $0xb8] sm:$0xff] }
  0x54   :  { %945 = vmatprep.subr.bf16.mxu0 %v944_v4  ;;  %v968_v4 = vpack.c.bf16 %v155_v61, %v152_v60  ;;  %v970_v11 = vpack.c.bf16 %v154_v5, %v151_v1  ;;  %v1038_v21 = vpack.c.bf16 %v66_v15, %v63_v14  ;;  %v163_v24 = vld [vmem:[#allocation2 + $0x390] sm:$0xff]  ;;  %v126_v30 = vld [vmem:[#allocation2 + $0x268] sm:$0xff]  ;;  %v173_v32 = vld [vmem:[#allocation2 + $0x3e0] sm:$0xff] }
  0x55   :  { %v123_v29 = vld [vmem:[#allocation2 + $0x250] sm:$0xff]  ;;  %v169_v35 = vld [vmem:[#allocation2 + $0x3c0] sm:$0xff]  ;;  %v172_v39 = vld [vmem:[#allocation2 + $0x3d8] sm:$0xff] }
  0x56   :  { %887 = vmatpush3.bf16.msra.mxu1 %v886_v9  ;;  %v161_v9 = vld [vmem:[#allocation2 + $0x380] sm:$0xff]  ;;  %v1044_v34 = vpack.c.bf16 %v126_v30, %v123_v29  ;;  %v176_v42 = vld [vmem:[#allocation2 + $0x3f8] sm:$0xff]  ;;  %v179_v44 = vld [vmem:[#allocation2 + $0x410] sm:$0xff]  ;;  %v982_v48 = vpack.c.bf16 %v172_v39, %v169_v35 }
  0x57   :  { %947 = vmatpush1.bf16.msra.mxu0 %v946_v10  ;;  %888 = vmatprep.subr.bf16.mxu1 %v1156_v45  ;;  %v1034_v10 = vpack.c.bf16 %v60_v3, %v57_v2  ;;  %v972_v16 = vpack.c.bf16 %v161_v9, %v158_v8  ;;  %v129_v40 = vld [vmem:[#allocation2 + $0x280] sm:$0xff]  ;;  %v175_v47 = vld [vmem:[#allocation2 + $0x3f0] sm:$0xff]  ;;  %v984_v53 = vpack.c.bf16 %v179_v44, %v176_v42  ;;  %v178_v54 = vld [vmem:[#allocation2 + $0x408] sm:$0xff] }
  0x58   :  { %949 = vmatprep.subr.bf16.mxu0 %v948_v13  ;;  %v157_v13 = vld [vmem:[#allocation2 + $0x360] sm:$0xff]  ;;  %v182_v57 = vld [vmem:[#allocation2 + $0x428] sm:$0xff]  ;;  %v986_v61 = vpack.c.bf16 %v178_v54, %v175_v47  ;;  %v184_v3 = vld [vmem:[#allocation2 + $0x438] sm:$0xff] }
  0x59   :  { %v185_v59 = vld [vmem:[#allocation2 + $0x440] sm:$0xff]  ;;  %v90_v1 = vld [vmem:[#allocation2 + $0x148] sm:$0xff]  ;;  %v144_v5 = vld [vmem:[#allocation2 + $0x2f8] sm:$0xff] }
  0x5a   :  { %890 = vmatpush3.bf16.msra.mxu1 %v889_v18  ;;  %v117_v18 = vld [vmem:[#allocation2 + $0x220] sm:$0xff]  ;;  %v988_v2 = vpack.c.bf16 %v185_v59, %v182_v57  ;;  %v188_v6 = vld [vmem:[#allocation2 + $0x458] sm:$0xff]  ;;  %v191_v7 = vld [vmem:[#allocation2 + $0x470] sm:$0xff] }
  0x5b   :  { %951 = vmatpush1.bf16.msra.mxu0 %v950_v19  ;;  %891 = vmatprep.subr.bf16.mxu1 %v1156_v45  ;;  %v120_v19 = vld [vmem:[#allocation2 + $0x238] sm:$0xff]  ;;  %v992_v14 = vpack.c.bf16 %v191_v7, %v188_v6  ;;  %v190_v15 = vld [vmem:[#allocation2 + $0x468] sm:$0xff]  ;;  %v203_v30 = vld [vmem:[#allocation2 + $0x4d0] sm:$0xff] }
  0x5c   :  { %953 = vmatprep.subr.bf16.mxu0 %v952_v22  ;;  %v974_v22 = vpack.c.bf16 %v160_v17, %v157_v13  ;;  %v1040_v23 = vpack.c.bf16 %v120_v19, %v117_v18  ;;  %v96_v13 = vld [vmem:[#allocation2 + $0x178] sm:$0xff]  ;;  %v198_v17 = vld [vmem:[#allocation2 + $0x4a8] sm:$0xff]  ;;  %v197_v19 = vld [vmem:[#allocation2 + $0x4a0] sm:$0xff] }
  0x5d   :  { %v194_v18 = vld [vmem:[#allocation2 + $0x488] sm:$0xff]  ;;  %v200_v29 = vld [vmem:[#allocation2 + $0x4b8] sm:$0xff]  ;;  %v205_v47 = vld [vmem:[#allocation2 + $0x4e0] sm:$0xff] }
  0x5e   :  { %893 = vmatpush3.bf16.msra.mxu1 %v892_v27  ;;  %v156_v35 = vld [vmem:[#allocation2 + $0x358] sm:$0xff]  ;;  %v210_v39 = vld [vmem:[#allocation2 + $0x508] sm:$0xff]  ;;  %v211_v59 = vld [vmem:[#allocation2 + $0x510] sm:$0xff] }
  0x5f   :  { %955 = vmatpush1.bf16.msra.mxu0 %v954_v28  ;;  %894 = vmatprep.subr.bf16.mxu1 %v1156_v45  ;;  %v166_v28 = vld [vmem:[#allocation2 + $0x3a8] sm:$0xff]  ;;  %v216_v54 = vld [vmem:[#allocation2 + $0x538] sm:$0xff]  ;;  %v217_v7 = vld [vmem:[#allocation2 + $0x540] sm:$0xff] }
  0x60   :  { %957 = vmatprep.subr.bf16.mxu0 %v956_v31  ;;  %v170_v31 = vld [vmem:[#allocation2 + $0x3c8] sm:$0xff]  ;;  %v978_v33 = vpack.c.bf16 %v166_v28, %v163_v24  ;;  %v204_v28 = vld [vmem:[#allocation2 + $0x4d8] sm:$0xff] }
  0x61   :  { %v980_v38 = vpack.c.bf16 %v173_v32, %v170_v31  ;;  %v150_v24 = vld [vmem:[#allocation2 + $0x328] sm:$0xff] }
  0x62   :  { %896 = vmatpush3.bf16.msra.mxu1 %v895_v36  ;;  %v75_v36 = vld [vmem:[#allocation2 + $0xd0] sm:$0xff] }
  0x63   :  { %959 = vmatpush1.bf16.msra.mxu0 %v958_v37  ;;  %897 = vmatprep.subr.bf16.mxu1 %v1156_v45  ;;  %v966_v45 = vpack.c.bf16 %v148_v56, %v145_v52  ;;  %v78_v37 = vld [vmem:[#allocation2 + $0xe8] sm:$0xff]  ;;  %v1240_v52 = vld [vmem:[%s1257_s0 + $0x18] sm:$0xff] }
  0x64   :  { %961 = vmatprep.subr.bf16.mxu0 %v960_v41  ;;  %v132_v41 = vld [vmem:[#allocation2 + $0x298] sm:$0xff]  ;;  %v1046_v46 = vpack.c.bf16 %v78_v37, %v75_v36  ;;  %v138_v56 = vld [vmem:[#allocation2 + $0x2c8] sm:$0xff]  ;;  %v1000_v36 = vpack.c.bf16 %v203_v30, %v200_v29  ;;  %v229_v30 = vld [vmem:[#allocation2 + $0x5a0] sm:$0xff] }
  0x65   :  { %v202_v37 = vld [vmem:[#allocation2 + $0x4c8] sm:$0xff] }
  0x66   :  { %899 = vmatpush3.bf16.msra.mxu1 %v898_v49  ;;  %v1048_v49 = vpack.c.bf16 %v132_v41, %v129_v40  ;;  %v206_v40 = vld [vmem:[#allocation2 + $0x4e8] sm:$0xff]  ;;  %v209_v41 = vld [vmem:[#allocation2 + $0x500] sm:$0xff] }
  0x67   :  { %963 = vmatpush1.bf16.msra.mxu0 %v962_v50  ;;  %1029 = vmatprep.subr.bf16.mxu1 %v1028_v51  ;;  %v81_v50 = vld [vmem:[#allocation2 + $0x100] sm:$0xff]  ;;  %v84_v51 = vld [vmem:[#allocation2 + $0x118] sm:$0xff] }
  0x68   :  { %965 = vmatprep.subr.bf16.mxu0 %v964_v55  ;;  %v135_v55 = vld [vmem:[#allocation2 + $0x2b0] sm:$0xff]  ;;  %v1050_v60 = vpack.c.bf16 %v84_v51, %v81_v50  ;;  %v1004_v50 = vpack.c.bf16 %v209_v41, %v206_v40  ;;  %v208_v51 = vld [vmem:[#allocation2 + $0x4f8] sm:$0xff]  ;;  %v189_v41 = vld [vmem:[#allocation2 + $0x460] sm:$0xff] }
  0x69   :  { %842 = vmatmul.mubr.f32.vlgmr.msra.gmra.mrb[2].mxu1 %v1211_v43  ;;  %v164_v43 = vld [vmem:[#allocation2 + $0x398] sm:$0xff]  ;;  %v1006_v57 = vpack.c.bf16 %v208_v51, %v205_v47  ;;  %v238_v47 = vld [vmem:[#allocation2 + $0x5e8] sm:$0xff] }
  0x6a   :  { %496 = vmatmul.mubr.f32.vlgmr.msra.gmra.mrb[0].mxu0 %v1232_v62  ;;  %1031 = vmatpush3.bf16.msra.mxu1 %v1030_v63  ;;  %v976_v27 = vpack.c.bf16 %v167_v20, %v164_v43  ;;  %v1052_v63 = vpack.c.bf16 %v138_v56, %v135_v55  ;;  %v212_v55 = vld [vmem:[#allocation2 + $0x518] sm:$0xff] }
  0x6b   :  { %967 = vmatpush1.bf16.msra.mxu0 %v966_v45  ;;  %1033 = vmatprep.subr.bf16.mxu1 %v1032_v0  ;;  %v181_v45 = vld [vmem:[#allocation2 + $0x420] sm:$0xff]  ;;  %v87_v0 = vld [vmem:[#allocation2 + $0x130] sm:$0xff] }
  0x6c   :  { %969 = vmatprep.subr.bf16.mxu0 %v968_v4  ;;  %637 = vmatprep.mubr.f32.mxu1 %v1220_v58  ;;  %v1042_v58 = vpack.c.bf16 %v72_v26, %v69_v25  ;;  %v141_v4 = vld [vmem:[#allocation2 + $0x2e0] sm:$0xff]  ;;  %v1054_v8 = vpack.c.bf16 %v90_v1, %v87_v0  ;;  %v990_v9 = vpack.c.bf16 %v184_v3, %v181_v45  ;;  %v196_v26 = vld [vmem:[#allocation2 + $0x498] sm:$0xff]  ;;  %v214_v45 = vld [vmem:[#allocation2 + $0x528] sm:$0xff] }
  0x6d   :  { %566 = vmatprep.mubr.f32.mxu0 %v1240_v52  ;;  %v996_v25 = vpack.c.bf16 %v197_v19, %v194_v18  ;;  %v219_v0 = vld [vmem:[#allocation2 + $0x550] sm:$0xff]  ;;  %v222_v1 = vld [vmem:[#allocation2 + $0x568] sm:$0xff]  ;;  %v221_v3 = vld [vmem:[#allocation2 + $0x560] sm:$0xff] }
  0x6e   :  { %1035 = vmatpush3.bf16.msra.mxu1 %v1034_v10  ;;  %v1056_v10 = vpack.c.bf16 %v144_v5, %v141_v4  ;;  %v1010_v5 = vpack.c.bf16 %v214_v45, %v211_v59  ;;  %v1076_v6 = vpack.c.bf16 %v222_v1, %v219_v0  ;;  %v223_v19 = vld [vmem:[#allocation2 + $0x570] sm:$0xff] }
  0x6f   :  { %971 = vmatpush1.bf16.msra.mxu0 %v970_v11  ;;  %1037 = vmatprep.subr.bf16.mxu1 %v1036_v12  ;;  %v187_v11 = vld [vmem:[#allocation2 + $0x450] sm:$0xff]  ;;  %v93_v12 = vld [vmem:[#allocation2 + $0x160] sm:$0xff] }
  0x70   :  { %973 = vmatprep.subr.bf16.mxu0 %v972_v16  ;;  %v195_v16 = vld [vmem:[#allocation2 + $0x490] sm:$0xff]  ;;  %v1058_v43 = vpack.c.bf16 %v96_v13, %v93_v12  ;;  %v994_v20 = vpack.c.bf16 %v190_v15, %v187_v11  ;;  %v220_v11 = vld [vmem:[#allocation2 + $0x558] sm:$0xff]  ;;  %v225_v12 = vld [vmem:[#allocation2 + $0x580] sm:$0xff] }
  0x71   :  { %v228_v13 = vld [vmem:[#allocation2 + $0x598] sm:$0xff]  ;;  %v227_v15 = vld [vmem:[#allocation2 + $0x590] sm:$0xff] }
  0x72   :  { %1039 = vmatpush3.bf16.msra.mxu1 %v1038_v21  ;;  %v1060_v21 = vpack.c.bf16 %v198_v17, %v195_v16  ;;  %v1014_v17 = vpack.c.bf16 %v220_v11, %v217_v7  ;;  %v1080_v18 = vpack.c.bf16 %v228_v13, %v225_v12 }
  0x73   :  { %975 = vmatpush1.bf16.msra.mxu0 %v974_v22  ;;  %1041 = vmatprep.subr.bf16.mxu1 %v1040_v23  ;;  %v193_v22 = vld [vmem:[#allocation2 + $0x480] sm:$0xff]  ;;  %v147_v23 = vld [vmem:[#allocation2 + $0x310] sm:$0xff] }
  0x74   :  { %977 = vmatprep.subr.bf16.mxu0 %v976_v27  ;;  %v201_v27 = vld [vmem:[#allocation2 + $0x4c0] sm:$0xff]  ;;  %v1062_v31 = vpack.c.bf16 %v150_v24, %v147_v23  ;;  %v998_v32 = vpack.c.bf16 %v196_v26, %v193_v22  ;;  %v226_v22 = vld [vmem:[#allocation2 + $0x588] sm:$0xff]  ;;  %v231_v23 = vld [vmem:[#allocation2 + $0x5b0] sm:$0xff] }
  0x75   :  { %v234_v24 = vld [vmem:[#allocation2 + $0x5c8] sm:$0xff]  ;;  %v233_v26 = vld [vmem:[#allocation2 + $0x5c0] sm:$0xff] }
  0x76   :  { %1043 = vmatpush3.bf16.msra.mxu1 %v1042_v58  ;;  %v1064_v58 = vpack.c.bf16 %v204_v28, %v201_v27  ;;  %v1018_v28 = vpack.c.bf16 %v226_v22, %v223_v19  ;;  %v1084_v29 = vpack.c.bf16 %v234_v24, %v231_v23 }
  0x77   :  { %979 = vmatpush1.bf16.msra.mxu0 %v978_v33  ;;  %1045 = vmatprep.subr.bf16.mxu1 %v1044_v34  ;;  %v199_v33 = vld [vmem:[#allocation2 + $0x4b0] sm:$0xff]  ;;  %v153_v34 = vld [vmem:[#allocation2 + $0x340] sm:$0xff] }
  0x78   :  { %981 = vmatprep.subr.bf16.mxu0 %v980_v38  ;;  %v207_v38 = vld [vmem:[#allocation2 + $0x4f0] sm:$0xff]  ;;  %v1066_v42 = vpack.c.bf16 %v156_v35, %v153_v34  ;;  %v1002_v44 = vpack.c.bf16 %v202_v37, %v199_v33  ;;  %v232_v33 = vld [vmem:[#allocation2 + $0x5b8] sm:$0xff]  ;;  %v237_v34 = vld [vmem:[#allocation2 + $0x5e0] sm:$0xff] }
  0x79   :  { %v240_v35 = vld [vmem:[#allocation2 + $0x5f8] sm:$0xff]  ;;  %v239_v37 = vld [vmem:[#allocation2 + $0x5f0] sm:$0xff] }
  0x7a   :  { %1047 = vmatpush3.bf16.msra.mxu1 %v1046_v46  ;;  %v1068_v46 = vpack.c.bf16 %v210_v39, %v207_v38  ;;  %v1022_v39 = vpack.c.bf16 %v232_v33, %v229_v30  ;;  %v1088_v40 = vpack.c.bf16 %v240_v35, %v237_v34 }
  0x7b   :  { %983 = vmatpush1.bf16.msra.mxu0 %v982_v48  ;;  %1049 = vmatprep.subr.bf16.mxu1 %v1048_v49  ;;  %v159_v48 = vld [vmem:[#allocation2 + $0x370] sm:$0xff]  ;;  %v162_v49 = vld [vmem:[#allocation2 + $0x388] sm:$0xff] }
  0x7c   :  { %985 = vmatprep.subr.bf16.mxu0 %v984_v53  ;;  %v213_v53 = vld [vmem:[#allocation2 + $0x520] sm:$0xff]  ;;  %v1070_v56 = vpack.c.bf16 %v162_v49, %v159_v48 }
  0x7e   :  { %1051 = vmatpush3.bf16.msra.mxu1 %v1050_v60  ;;  %v165_v60 = vld [vmem:[#allocation2 + $0x3a0] sm:$0xff] }
  0x7f   :  { %987 = vmatpush1.bf16.msra.mxu0 %v986_v61  ;;  %1053 = vmatprep.subr.bf16.mxu1 %v1052_v63  ;;  %v168_v61 = vld [vmem:[#allocation2 + $0x3b8] sm:$0xff] }
  0x80   :  { %989 = vmatprep.subr.bf16.mxu0 %v988_v2  ;;  %v218_v2 = vld [vmem:[#allocation2 + $0x548] sm:$0xff]  ;;  %v1074_v4 = vpack.c.bf16 %v168_v61, %v165_v60 }
  0x82   :  { %1055 = vmatpush3.bf16.msra.mxu1 %v1054_v8  ;;  %v171_v8 = vld [vmem:[#allocation2 + $0x3d0] sm:$0xff] }
  0x83   :  { %991 = vmatpush1.bf16.msra.mxu0 %v990_v9  ;;  %1057 = vmatprep.subr.bf16.mxu1 %v1056_v10  ;;  %v174_v9 = vld [vmem:[#allocation2 + $0x3e8] sm:$0xff]  ;;  %v1012_v10 = vpack.c.bf16 %v221_v3, %v218_v2 }
  0x84   :  { %993 = vmatprep.subr.bf16.mxu0 %v992_v14  ;;  %v224_v14 = vld [vmem:[#allocation2 + $0x578] sm:$0xff]  ;;  %v1078_v16 = vpack.c.bf16 %v174_v9, %v171_v8 }
  0x86   :  { %1059 = vmatpush3.bf16.msra.mxu1 %v1058_v43  ;;  %v177_v43 = vld [vmem:[#allocation2 + $0x400] sm:$0xff] }
  0x87   :  { %995 = vmatpush1.bf16.msra.mxu0 %v994_v20  ;;  %1061 = vmatprep.subr.bf16.mxu1 %v1060_v21  ;;  %v180_v20 = vld [vmem:[#allocation2 + $0x418] sm:$0xff]  ;;  %v1016_v21 = vpack.c.bf16 %v227_v15, %v224_v14 }
  0x88   :  { %997 = vmatprep.subr.bf16.mxu0 %v996_v25  ;;  %v230_v25 = vld [vmem:[#allocation2 + $0x5a8] sm:$0xff]  ;;  %v1082_v27 = vpack.c.bf16 %v180_v20, %v177_v43 }
  0x89   :  { %638 = vmatmul.mubr.f32.vlgmr.msra.gmra.mrb[4].mxu1 %v1232_v62  ;;  %v215_v62 = vld [vmem:[#allocation2 + $0x530] sm:$0xff] }
  0x8a   :  { %1063 = vmatpush3.bf16.msra.mxu1 %v1062_v31  ;;  %707 = vmatprep.mubr.f32.mxu1 %v1240_v52  ;;  %v1072_v52 = vpack.c.bf16 %v216_v54, %v213_v53  ;;  %v1008_v63 = vpack.c.bf16 %v215_v62, %v212_v55  ;;  %v183_v31 = vld [vmem:[#allocation2 + $0x430] sm:$0xff] }
  0x8b   :  { %999 = vmatpush1.bf16.msra.mxu0 %v998_v32  ;;  %1065 = vmatprep.subr.bf16.mxu1 %v1064_v58  ;;  %v186_v32 = vld [vmem:[#allocation2 + $0x448] sm:$0xff]  ;;  %v1020_v58 = vpack.c.bf16 %v233_v26, %v230_v25 }
  0x8c   :  { %1001 = vmatprep.subr.bf16.mxu0 %v1000_v36  ;;  %v236_v36 = vld [vmem:[#allocation2 + $0x5d8] sm:$0xff]  ;;  %v1086_v38 = vpack.c.bf16 %v186_v32, %v183_v31 }
  0x8e   :  { %1067 = vmatpush3.bf16.msra.mxu1 %v1066_v42  ;;  %v192_v42 = vld [vmem:[#allocation2 + $0x478] sm:$0xff] }
  0x8f   :  { %1003 = vmatpush1.bf16.msra.mxu0 %v1002_v44  ;;  %1069 = vmatprep.subr.bf16.mxu1 %v1068_v46  ;;  %v1024_v44 = vpack.c.bf16 %v239_v37, %v236_v36  ;;  %v235_v46 = vld [vmem:[#allocation2 + $0x5d0] sm:$0xff]  ;;  %v1090_v48 = vpack.c.bf16 %v192_v42, %v189_v41 }
  0x90   :  { %1005 = vmatprep.subr.bf16.mxu0 %v1004_v50  ;;  %v1026_v49 = vpack.c.bf16 %v238_v47, %v235_v46  ;;  %v47_v50 = vld [vmem:[%s1257_s0 + $0x10] sm:$0xff] }
  0x92   :  { %1071 = vmatpush3.bf16.msra.mxu1 %v1070_v56 }
  0x93   :  { %1007 = vmatpush1.bf16.msra.mxu0 %v1006_v57  ;;  %1073 = vmatprep.subr.bf16.mxu1 %v1072_v52 }
  0x94   :  { %1009 = vmatprep.subr.bf16.mxu0 %v1008_v63 }
  0x96   :  { %1075 = vmatpush3.bf16.msra.mxu1 %v1074_v4 }
  0x97   :  { %1011 = vmatpush1.bf16.msra.mxu0 %v1010_v5  ;;  %1077 = vmatprep.subr.bf16.mxu1 %v1076_v6 }
  0x98   :  { %1013 = vmatprep.subr.bf16.mxu0 %v1012_v10 }
  0x9a   :  { %1079 = vmatpush3.bf16.msra.mxu1 %v1078_v16 }
  0x9b   :  { %1015 = vmatpush1.bf16.msra.mxu0 %v1014_v17  ;;  %1081 = vmatprep.subr.bf16.mxu1 %v1080_v18 }
  0x9c   :  { %1017 = vmatprep.subr.bf16.mxu0 %v1016_v21 }
  0x9e   :  { %1083 = vmatpush3.bf16.msra.mxu1 %v1082_v27 }
  0x9f   :  { %1019 = vmatpush1.bf16.msra.mxu0 %v1018_v28  ;;  %1085 = vmatprep.subr.bf16.mxu1 %v1084_v29 }
  0xa0   :  { %1021 = vmatprep.subr.bf16.mxu0 %v1020_v58 }
  0xa2   :  { %1087 = vmatpush3.bf16.msra.mxu1 %v1086_v38 }
  0xa3   :  { %1023 = vmatpush1.bf16.msra.mxu0 %v1022_v39  ;;  %1089 = vmatprep.subr.bf16.mxu1 %v1088_v40 }
  0xa4   :  { %1025 = vmatprep.subr.bf16.mxu0 %v1024_v44 }
  0xa6   :  { %1091 = vmatpush3.bf16.msra.mxu1 %v1090_v48 }
  0xa7   :  { %1027 = vmatpush1.bf16.msra.mxu0 %v1026_v49 }
  0xa9   :  { %708 = vmatmul.mubr.f32.vlgmr.msra.gmra.mrb[6].mxu1 %v47_v50 }
  0xaa   :  { %567 = vmatmul.mubr.f32.vlgmr.msra.gmra.mrb[0].mxu0 %v47_v50 }
 0x11c   :  { %v356_v51 = vpop.f32.mrb[0].mxu1 }
 0x11d   :  { %v358_v53 = vpop.f32.mrb[1].mxu1 }
 0x13c   :  { %v427_v54 = vpop.f32.mrb[2].mxu1 }
 0x13d   :  { %v843_v55 = vpop.f32.mrb[3].mxu1 }
 0x15c   :  { %v771_v62 = vpop.f32.mrb[4].mxu1 }
 0x15d   :  { %v772_v56 = vpop.f32.mrb[5].mxu1 }
 0x15e   :  { %v773_v57 = vadd.f32 %v772_v56, %v771_v62 }
 0x160   :  { %v640_v52 = vadd.f32 %v773_v57, %v427_v54 }
 0x17c   :  { %v806_v59 = vpop.f32.mrb[6].mxu1 }
 0x17d   :  { %v568_v60 = vpop.f32.mrb[0].mxu0  ;;  %v807_v61 = vpop.f32.mrb[7].mxu1 }
 0x17e   :  { %v1092_v63 = vadd.f32 %v568_v60, %v356_v51  ;;  %v570_v45 = vpop.f32.mrb[1].mxu0  ;;  %v808_v0 = vadd.f32 %v807_v61, %v806_v59 }
 0x17f   :  { %v1093_v1 = vadd.f32 %v570_v45, %v358_v53 }
 0x180   :  { %713 = vst [vmem:[%s1261_s4] sm:$0xff] %v1092_v63  ;;  %v710_v2 = vadd.f32 %v808_v0, %v640_v52 }
 0x181   :  { %714 = vst [vmem:[%s1261_s4 + $0x8] sm:$0xff] %v1093_v1 }
 0x182   :  { %715 = vst [vmem:[%s1261_s4 + $0x10] sm:$0xff] %v710_v2 }
 0x183   :  { %720 = vsyncpa [#allocation3], 1 }
 0x184   :  { %721 = vsyncpa [#allocation5], 1 }

</bundles_post_ra>
